<compile_context>
chip_gen: v7x
topology: tpu7x:2x2x1
jax: 0.10.0
libtpu: 0.0.40
codegen_flags: <defaults>
</compile_context>

<pallas_src>
import functools

import jax
import jax.numpy as jnp
from jax.experimental import pallas as pl
from jax.experimental.pallas import tpu as pltpu


def _focal_loss_kernel(logits_ref, targets_ref, out_ref, acc_ref, *,
                       alpha, gamma, n_total, tile_n, steps_per_slice,
                       inv_scale, needs_tail_mask):
    p = pl.program_id(0)   # parallel slice (uses both TCs on v7x)
    i = pl.program_id(1)   # sequential reduction step within the slice

    @pl.when(i == 0)
    def _init():
        acc_ref[...] = jnp.zeros_like(acc_ref)

    x = logits_ref[...].astype(jnp.float32)          # (tn, C) f32 working copy
    t = targets_ref[...]                             # (tn, 1) int32
    tn, c = x.shape

    # Numerically stable log-softmax -> per-sample cross entropy.
    m = jnp.max(x, axis=-1, keepdims=True)                               # (tn, 1)
    lse = m + jnp.log(jnp.sum(jnp.exp(x - m), axis=-1, keepdims=True))   # (tn, 1)

    # Gather the logit at the target class via a one-hot select (no dynamic
    # gather primitive on TPU).
    cls_idx = jax.lax.broadcasted_iota(jnp.int32, (tn, c), 1)
    picked = jnp.sum(jnp.where(cls_idx == t, x, 0.0), axis=-1, keepdims=True)

    ce = lse - picked                                 # cross_entropy(reduction='none')
    pt = jnp.exp(-ce)
    one_minus_pt = jnp.maximum(1.0 - pt, 0.0)         # clamp tiny negatives (pt > 1)

    # Integer gamma -> unrolled multiply chain on the VPU; only fall back to a
    # true pow (EUP log+exp) for non-integer gamma.
    if float(gamma) == int(gamma) and 0 <= int(gamma) <= 8:
        w = jnp.ones_like(one_minus_pt)
        for _ in range(int(gamma)):
            w = w * one_minus_pt
    else:
        w = one_minus_pt ** jnp.float32(gamma)

    focal = (alpha * w) * ce                          # (tn, 1)

    if needs_tail_mask:
        # Mask padded rows of the last (ragged) tile out of the sum. Garbage
        # logits in the padded rows may produce NaN/Inf in `focal`, but the
        # select keeps only the 0.0 branch for those rows.
        row_start = (p * steps_per_slice + i) * tile_n
        row_ids = row_start + jax.lax.broadcasted_iota(jnp.int32, (tn, 1), 0)
        focal = jnp.where(row_ids < n_total, focal, 0.0)

    acc_ref[...] += jnp.sum(focal, keepdims=True)     # (1, 1) running sum

    @pl.when(i == pl.num_programs(1) - 1)
    def _finalize():
        # Per-slice partial of the global mean (sum * 1/N); slices are summed
        # in the wrapper.
        out_ref[0] = acc_ref[...] * inv_scale


def _vmem_limit_bytes():
    """Generation-aware scoped-VMEM limit: 3/4 of physical, capped at 96 MiB."""
    phys = 0
    try:
        info = pltpu.get_tpu_info()
        phys = int(getattr(info, "vmem_capacity_bytes", 0) or 0)
    except Exception:
        phys = 0
    if phys <= 0:
        phys = 64 << 20            # assume smallest (v7x) physical VMEM
    return int(min((phys * 3) // 4, 96 << 20))


def _choose_tile_n(n, c, in_itemsize, vmem_limit):
    """Pick an N-tile sized by bytes against the scoped-VMEM budget.

    Counts the *VMEM* footprint (lane dim padded to 128) of:
      - 2x double-buffered logits blocks,
      - 2x double-buffered (tile_n, 1) int32 targets blocks (padded to 128 lanes),
      - the in-kernel f32 working set (upcast copy, exp / select transients),
      - per-row (tile_n, 1) f32 temporaries (generous allowance),
    and leaves 8 MiB of headroom for compiler scratch / spills.
    """
    c_pad = max(128, ((c + 127) // 128) * 128)
    per_row = (2 * c_pad * in_itemsize      # pipelined logits buffers
               + 2 * 128 * 4                # pipelined targets buffers (lane-padded)
               + 3 * c_pad * 4              # f32 copy + exp + select transients
               + 8 * 128 * 4)               # (T,1) f32 per-row temporaries
    block_budget = max(vmem_limit - (8 << 20), 8 << 20)
    tn = block_budget // per_row
    sub = max(8, 32 // max(int(in_itemsize), 1))   # 8 for f32, 16 for bf16
    if tn >= n:
        return n
    return int(max(sub, (tn // sub) * sub))


def focal_loss(inputs, targets, *, alpha=1.0, gamma=2.0, tile_n=None):
    """Pallas implementation of FocalLoss.forward with reduction='mean'.

    inputs:  f32/bf16 [N, C] logits
    targets: int [N] class indices
    returns: f32 scalar
    """
    # TODO(synk): reduction='sum'/'none' variants of the module are not exposed;
    # only the default reduction='mean' path is implemented here.
    n, c = inputs.shape
    targets2d = targets.astype(jnp.int32).reshape(n, 1)
    itemsize = jnp.dtype(inputs.dtype).itemsize
    vmem_limit = _vmem_limit_bytes()

    if tile_n is None:
        tile_n = _choose_tile_n(n, c, itemsize, vmem_limit)
    tile_n = int(tile_n)
    sub = max(8, 32 // max(itemsize, 1))
    if tile_n >= n:
        tile_n = n                                   # single full block
    else:
        tile_n = max(sub, (tile_n // sub) * sub)     # sublane alignment

    grid_n = pl.cdiv(n, tile_n)
    # Use both TensorCores (v7x megacore) when the step count splits evenly;
    # harmless (same total steps) on single-TC v5e/v6e.
    num_slices = 2 if (grid_n >= 2 and grid_n % 2 == 0) else 1
    steps = grid_n // num_slices
    needs_tail_mask = (n % tile_n) != 0

    kernel = functools.partial(
        _focal_loss_kernel,
        alpha=float(alpha),
        gamma=float(gamma),
        n_total=n,
        tile_n=tile_n,
        steps_per_slice=steps,
        inv_scale=1.0 / float(n),
        needs_tail_mask=needs_tail_mask,
    )

    cost = pl.CostEstimate(
        flops=8 * n * c,
        transcendentals=n * c + 2 * n,
        bytes_accessed=n * c * itemsize + n * 4 + 4 * num_slices,
    )

    partial_sums = pl.pallas_call(
        kernel,
        out_shape=jax.ShapeDtypeStruct((num_slices, 1, 1), jnp.float32),
        grid=(num_slices, steps),
        in_specs=[
            pl.BlockSpec((tile_n, c), lambda p, i: (p * steps + i, 0)),
            pl.BlockSpec((tile_n, 1), lambda p, i: (p * steps + i, 0)),
        ],
        out_specs=pl.BlockSpec((1, 1, 1), lambda p, i: (p, 0, 0)),
        scratch_shapes=[pltpu.VMEM((1, 1), jnp.float32)],
        compiler_params=pltpu.CompilerParams(
            dimension_semantics=("parallel", "arbitrary"),
            vmem_limit_bytes=int(vmem_limit),
        ),
        cost_estimate=cost,
    )(inputs, targets2d)
    return jnp.sum(partial_sums)


if __name__ == "__main__":
    key = jax.random.PRNGKey(0)
    k1, k2, k3, k4, k5, k6 = jax.random.split(key, 6)

    def ref_focal(x, t, alpha=1.0, gamma=2.0):
        lse = jax.nn.logsumexp(x, axis=-1)
        picked = jnp.take_along_axis(x, t[:, None], axis=-1)[:, 0]
        ce = lse - picked
        pt = jnp.exp(-ce)
        return jnp.mean(alpha * (1.0 - pt) ** gamma * ce)

    # Small case consistent with the module's forward: batch=8, classes=32.
    N, C = 8, 32
    logits = jax.random.normal(k1, (N, C), dtype=jnp.float32)
    targets = jax.random.randint(k2, (N,), 0, C, dtype=jnp.int32)
    loss = focal_loss(logits, targets, alpha=1.0, gamma=2.0)
    jax.block_until_ready(loss)
    assert jnp.allclose(loss, ref_focal(logits, targets), rtol=1e-5, atol=1e-5), (
        loss, ref_focal(logits, targets))

    # Ragged tail (300 % 64 != 0), odd step count -> single-slice accumulator
    # path with tail masking.
    N2, C2 = 300, 32
    logits2 = jax.random.normal(k3, (N2, C2), dtype=jnp.float32)
    targets2 = jax.random.randint(k4, (N2,), 0, C2, dtype=jnp.int32)
    loss2 = focal_loss(logits2, targets2, tile_n=64)
    jax.block_until_ready(loss2)
    assert jnp.allclose(loss2, ref_focal(logits2, targets2), rtol=1e-5, atol=1e-5), (
        loss2, ref_focal(logits2, targets2))

    # Even step count + ragged tail -> exercises the 2-slice "parallel" axis
    # with per-slice partial sums (megacore path on v7x).
    N3, C3 = 1000, 32
    logits3 = jax.random.normal(k5, (N3, C3), dtype=jnp.float32)
    targets3 = jax.random.randint(k6, (N3,), 0, C3, dtype=jnp.int32)
    loss3 = focal_loss(logits3, targets3, tile_n=128)
    jax.block_until_ready(loss3)
    assert jnp.allclose(loss3, ref_focal(logits3, targets3), rtol=1e-5, atol=1e-5), (
        loss3, ref_focal(logits3, targets3))

    print("KERNEL_OK")
</pallas_src>

<mosaic_0001>
module attributes {stable_mosaic.version = 11 : i64} {
  func.func @_focal_loss_kernel(%arg0: i32, %arg1: i32, %arg2: memref<8x32xf32, #tpu.memory_space<vmem>>, %arg3: memref<8x1xi32, #tpu.memory_space<vmem>>, %arg4: memref<1x1x1xf32, #tpu.memory_space<vmem>>, %arg5: memref<1x1xf32, #tpu.memory_space<vmem>>) attributes {dimension_semantics = [#tpu.dimension_semantics<parallel>, #tpu.dimension_semantics<arbitrary>], iteration_bounds = array<i64: 1, 1>, scalar_prefetch = 0 : i64, scratch_operands = 1 : i64, tpu.core_type = #tpu.core_type<tc>, window_params = [{transform_indices = @transform_0, window_bounds = array<i64: 8, 32>}, {transform_indices = @transform_1, window_bounds = array<i64: 8, 1>}, {transform_indices = @transform_2, window_bounds = array<i64: 1, 1, 1>}]} {
    %c0_i32 = arith.constant 0 : i32
    %0 = arith.cmpi eq, %arg1, %c0_i32 : i32
    %1 = arith.extui %0 : i1 to i32
    %c0_i32_0 = arith.constant 0 : i32
    %2 = arith.cmpi ne, %1, %c0_i32_0 : i32
    scf.if %2 {
      %cst_19 = arith.constant 0.000000e+00 : f32
      %46 = vector.broadcast %cst_19 : f32 to vector<1x1xf32>
      %c0_20 = arith.constant 0 : index
      %c0_21 = arith.constant 0 : index
      %47 = vector.load %arg5[%c0_20, %c0_21] : memref<1x1xf32, #tpu.memory_space<vmem>>, vector<1x1xf32>
      tpu.vector_store %arg5[%c0_20, %c0_21], %46 {strides = array<i32>} : memref<1x1xf32, #tpu.memory_space<vmem>>, vector<1x1xf32>,
    } else {
    }
    %c0 = arith.constant 0 : index
    %c0_1 = arith.constant 0 : index
    %3 = vector.load %arg2[%c0, %c0_1] : memref<8x32xf32, #tpu.memory_space<vmem>>, vector<8x32xf32>
    %c0_2 = arith.constant 0 : index
    %c0_3 = arith.constant 0 : index
    %4 = vector.load %arg3[%c0_2, %c0_3] : memref<8x1xi32, #tpu.memory_space<vmem>>, vector<8x1xi32>
    %cst = arith.constant dense<0xFF800000> : vector<8xf32>
    %5 = vector.multi_reduction <maximumf>, %3, %cst [1] : vector<8x32xf32> to vector<8xf32>
    %6 = vector.shape_cast %5 : vector<8xf32> to vector<8x1xf32>
    %7 = vector.broadcast %6 : vector<8x1xf32> to vector<8x32xf32>
    %8 = arith.subf %3, %7 : vector<8x32xf32>
    %9 = math.exp %8 : vector<8x32xf32>
    %cst_4 = arith.constant dense<0.000000e+00> : vector<8xf32>
    %10 = vector.multi_reduction <add>, %9, %cst_4 [1] : vector<8x32xf32> to vector<8xf32>
    %11 = vector.shape_cast %10 : vector<8xf32> to vector<8x1xf32>
    %12 = math.log %11 : vector<8x1xf32>
    %13 = arith.addf %6, %12 : vector<8x1xf32>
    %14 = tpu.iota {dimensions = array<i32: 1>} : vector<8x32xi32>
    %15 = vector.broadcast %4 : vector<8x1xi32> to vector<8x32xi32>
    %16 = arith.cmpi eq, %14, %15 : vector<8x32xi32>
    %cst_5 = arith.constant 0.000000e+00 : f32
    %17 = vector.broadcast %cst_5 : f32 to vector<8x32xf32>
    %18 = arith.select %16, %3, %17 : vector<8x32xi1>, vector<8x32xf32>
    %cst_6 = arith.constant dense<0.000000e+00> : vector<8xf32>
    %19 = vector.multi_reduction <add>, %18, %cst_6 [1] : vector<8x32xf32> to vector<8xf32>
    %20 = vector.shape_cast %19 : vector<8xf32> to vector<8x1xf32>
    %21 = arith.subf %13, %20 : vector<8x1xf32>
    %cst_7 = arith.constant 0.000000e+00 : f32
    %22 = vector.broadcast %cst_7 : f32 to vector<8x1xf32>
    %23 = arith.subf %22, %21 : vector<8x1xf32>
    %24 = math.exp %23 : vector<8x1xf32>
    %cst_8 = arith.constant 1.000000e+00 : f32
    %25 = vector.broadcast %cst_8 : f32 to vector<8x1xf32>
    %26 = arith.subf %25, %24 : vector<8x1xf32>
    %cst_9 = arith.constant 0.000000e+00 : f32
    %27 = vector.broadcast %cst_9 : f32 to vector<8x1xf32>
    %28 = arith.maximumf %26, %27 : vector<8x1xf32>
    %cst_10 = arith.constant 1.000000e+00 : f32
    %29 = vector.broadcast %cst_10 : f32 to vector<8x1xf32>
    %30 = arith.mulf %29, %28 : vector<8x1xf32>
    %31 = arith.mulf %30, %28 : vector<8x1xf32>
    %cst_11 = arith.constant 1.000000e+00 : f32
    %32 = vector.broadcast %cst_11 : f32 to vector<8x1xf32>
    %33 = arith.mulf %32, %31 : vector<8x1xf32>
    %34 = arith.mulf %33, %21 : vector<8x1xf32>
    %c0_12 = arith.constant 0 : index
    %c0_13 = arith.constant 0 : index
    %35 = vector.load %arg5[%c0_12, %c0_13] : memref<1x1xf32, #tpu.memory_space<vmem>>, vector<1x1xf32>
    %36 = vector.shape_cast %34 : vector<8x1xf32> to vector<1x8x1xf32>
    %cst_14 = arith.constant dense<0.000000e+00> : vector<1xf32>
    %37 = vector.multi_reduction <add>, %36, %cst_14 [1, 2] : vector<1x8x1xf32> to vector<1xf32>
    %38 = vector.shape_cast %37 : vector<1xf32> to vector<1x1x1xf32>
    %39 = vector.extract %38[0, 0, 0] : f32 from vector<1x1x1xf32>
    %40 = vector.broadcast %39 : f32 to vector<1x1xf32>
    %41 = arith.addf %35, %40 : vector<1x1xf32>
    %c0_15 = arith.constant 0 : index
    %c0_16 = arith.constant 0 : index
    %42 = vector.load %arg5[%c0_15, %c0_16] : memref<1x1xf32, #tpu.memory_space<vmem>>, vector<1x1xf32>
    tpu.vector_store %arg5[%c0_15, %c0_16], %41 {strides = array<i32>} : memref<1x1xf32, #tpu.memory_space<vmem>>, vector<1x1xf32>,
    %c0_i32_17 = arith.constant 0 : i32
    %43 = arith.cmpi eq, %arg1, %c0_i32_17 : i32
    %44 = arith.extui %43 : i1 to i32
    %c0_i32_18 = arith.constant 0 : i32
    %45 = arith.cmpi ne, %44, %c0_i32_18 : i32
    scf.if %45 {
      %c0_19 = arith.constant 0 : index
      %c0_20 = arith.constant 0 : index
      %46 = vector.load %arg5[%c0_19, %c0_20] : memref<1x1xf32, #tpu.memory_space<vmem>>, vector<1x1xf32>
      %cst_21 = arith.constant 1.250000e-01 : f32
      %47 = vector.broadcast %cst_21 : f32 to vector<1x1xf32>
      %48 = arith.mulf %46, %47 : vector<1x1xf32>
      %c0_22 = arith.constant 0 : index
      %c0_23 = arith.constant 0 : index
      %c0_24 = arith.constant 0 : index
      %49 = vector.load %arg4[%c0_22, %c0_23, %c0_24] : memref<1x1x1xf32, #tpu.memory_space<vmem>>, vector<1x1x1xf32>
      %50 = vector.shape_cast %49 : vector<1x1x1xf32> to vector<1x1xf32>
      %51 = vector.shape_cast %48 : vector<1x1xf32> to vector<1x1x1xf32>
      tpu.vector_store %arg4[%c0_22, %c0_23, %c0_24], %51 {strides = array<i32>} : memref<1x1x1xf32, #tpu.memory_space<vmem>>, vector<1x1x1xf32>,
    } else {
    }
    return
  }
  func.func @transform_0(%arg0: i32, %arg1: i32) -> (i32, i32) {
    %c1_i32 = arith.constant 1 : i32
    %0 = arith.muli %arg0, %c1_i32 : i32
    %1 = arith.addi %0, %arg1 : i32
    %c0_i32 = arith.constant 0 : i32
    %c0_i32_0 = arith.constant 0 : i32
    return %1, %c0_i32 : i32, i32
  }
  func.func @transform_1(%arg0: i32, %arg1: i32) -> (i32, i32) {
    %c1_i32 = arith.constant 1 : i32
    %0 = arith.muli %arg0, %c1_i32 : i32
    %1 = arith.addi %0, %arg1 : i32
    %c0_i32 = arith.constant 0 : i32
    %c0_i32_0 = arith.constant 0 : i32
    return %1, %c0_i32 : i32, i32
  }
  func.func @transform_2(%arg0: i32, %arg1: i32) -> (i32, i32, i32) {
    %c0_i32 = arith.constant 0 : i32
    %c0_i32_0 = arith.constant 0 : i32
    %c0_i32_1 = arith.constant 0 : i32
    return %arg0, %c0_i32, %c0_i32_0 : i32, i32, i32
  }
}

</mosaic_0001>

<bundles_post_ra>
// kernel: tpu_custom_call.1
= control target key start
LH: loop header
LB: loop body
LE: loop exit
PB: predicated region body
PF: predicated region fallthrough
CT: control target
= control target key end

     0   :  { %vm54_vm0 = vcmask 261120   ;;  %s211_s0 = inlined_call_operand.vmem [shape: f32[8,32], index: 0, kind: input, shape index: {}]   ;;  %s212_s1 = inlined_call_operand.vmem [shape: s32[8,1], index: 1, kind: input, shape index: {}]   ;;  %s213_s2 = inlined_call_operand.hbm [shape: f32[1,1,1], index: 2, kind: output, shape index: {}]  }
   0x1   :  { %v52_v0 = vld [vmem:[%s211_s0] sm:$0xff] }
   0x2   :  { %7 = vsyncpa [#allocation4], 0  ;;  %v55_v1 = vsel %vm54_vm0, %v52_v0, -inf  ;;  %v169_v2 = vmov 0   ;;  %v53_v3 = vld [vmem:[%s212_s1] sm:$0xff]  ;;  %v67_v7 = vlaneseq  ;;  %vm86_vm2 = vcmask 7168  }
   0x3   :  { %138 = vset.pattern.permute.xlu0 %v169_v2  ;;  %vm50_vm3 = vcmask 0   ;;  %v170_v28 = vmov 0.0   ;;  %s171_s1 = smov [#allocation3]  }
   0x4   :  { %56 = vmax.xlane.f32.xlu0 %v55_v1  ;;  %v68_v8 = vand.u32 127, %v67_v7  ;;  %51 = vst.msk [vmem:[#allocation2] sm:$0x1] %vm50_vm3, %v170_v28  ;;  %s113_s13 = sshll.u32 %s171_s1, 4  ;;  %s114_s13 = int_to_ptr.vmem [resolvable:$true] %s113_s13 }
   0x5   :  { %s145_s14 = scalar_lea.vmem %s114_s13, 16  ;;  %s149_s15 = scalar_lea.vmem %s114_s13, 32 }
   0x6   :  { %p146_p0 = scmp.ne.s32.totalorder %s114_s13, %s145_s14  ;;  %p150_p1 = scmp.lt.s32.totalorder %s114_s13, %s114_s13 }
   0x7   :  { %p151_p2 = scmp.lt.s32.totalorder %s149_s15, %s145_s14 }
   0x9   :  { %p152_p3 = por %p151_p2, %p150_p1 }
   0xb   :  { %v85_v36 = vld [vmem:[#allocation2] sm:$0x1]  ;;  %p153_p4 = pnand %p152_p3, %p146_p0 }
  0x1a   :  { %70 = vperm.xlu0 %138, %v53_v3  }
  0x91   :  { %v57_v4 = vpop.xlane.xlu0 %56 }
  0x92   :  { %v58_v5 = vsub.f32 %v52_v0, %v57_v4 }
  0x94   :  { %v59_v6 = vmul.f32 1.442695, %v58_v5 }
  0x96   :  { %139 = vpow2.f32 %v59_v6 }
  0x99   :  { %v71_v9 = vpop.permute.xlu0 %70 }
  0x9a   :  { %vm72_vm1 = vcmp.eq.s32.totalorder %v68_v8, %v71_v9 }
  0x9b   :  { %v73_v11 = vsel %vm72_vm1, %v52_v0, 0.0 }
  0x9c   :  { %v74_v13 = vsel %vm54_vm0, %v73_v11, 0.0 }
  0xa0   :  { %v140_v10 = vpop.eup %139 }
  0xa1   :  { %v61_v12 = vsel %vm54_vm0, %v140_v10, 0.0 }
  0xa2   :  { %62 = vadd.xlane.f32.xlu1 %v61_v12 }
  0xa6   :  { %75 = vadd.xlane.f32.xlu1 %v74_v13 }
 0x12f   :  { %v63_v14 = vpop.xlane.xlu1 %62 }
 0x130   :  { %141 = vlog2.f32 %v63_v14 }
 0x133   :  { %v76_v17 = vpop.xlane.xlu1 %75 }
 0x13a   :  { %v142_v15 = vpop.eup %141 }
 0x13b   :  { %v65_v16 = vmul.f32 0.6931472, %v142_v15 }
 0x13d   :  { %v66_v18 = vadd.f32 %v65_v16, %v57_v4 }
 0x13f   :  { %v77_v19 = vsub.f32 %v66_v18, %v76_v17 }
 0x141   :  { %v78_v20 = vsub.f32 0.0, %v77_v19 }
 0x143   :  { %v79_v21 = vmul.f32 1.442695, %v78_v20 }
 0x145   :  { %143 = vpow2.f32 %v79_v21 }
 0x14f   :  { %v144_v22 = vpop.eup %143 }
 0x150   :  { %v81_v23 = vsub.f32 1.0, %v144_v22 }
 0x152   :  { %v82_v24 = vmax.f32 %v81_v23, 0.0 }
 0x154   :  { %v83_v25 = vmul.f32 %v82_v24, %v82_v24 }
 0x156   :  { %v84_v26 = vmul.f32 %v83_v25, %v77_v19 }
 0x158   :  { %v87_v27 = vsel %vm86_vm2, %v84_v26, 0.0 }
 0x159   :  { %88 = vadd.xlane.f32.xlu1 %v87_v27 }
 0x1e6   :  { %v89_v29 = vpop.xlane.xlu1 %88 }
 0x1e7   :  { %v90_v30 = vrot.slane %v89_v29, 4 }
 0x1e9   :  { %v91_v31 = vadd.f32 %v90_v30, %v89_v29 }
 0x1eb   :  { %v92_v32 = vrot.slane %v91_v31, 2 }
 0x1ed   :  { %v93_v33 = vadd.f32 %v92_v32, %v91_v31 }
 0x1ef   :  { %v94_v34 = vrot.slane %v93_v33, 1 }
 0x1f1   :  { %v95_v35 = vadd.f32 %v94_v34, %v93_v33 }
 0x1f3   :  { %133 = vpush %v95_v35 }
 0x224   :  { %s134_s0 = spop %133 }
 0x225   :  { %v97_v37 = vstv %s134_s0 }
 0x226   :  { %v98_v38 = vadd.f32 %v97_v37, %v85_v36 }
 0x228   :  { %100 = vst.msk [vmem:[#allocation2] sm:$0x1] %vm50_vm3, %v98_v38 }
 0x22f   :  { %v104_v39 = vld [vmem:[#allocation2] sm:$0x1] }
 0x230   :  { %v105_v40 = vmul.f32 0.125, %v104_v39 }
 0x232   :  { %106 = vst.msk [vmem:[#allocation3] sm:$0x1] %vm50_vm3, %v105_v40 }
 0x233   :  { %156 = shalt.err (!%p153_p4)
}
 0x234   :  { %s157_s18 = scalar_lea.hbm %s213_s2, 16 }
 0x235   :  { %p158_p5 = scmp.ne.s32.totalorder %s213_s2, %s157_s18  ;;  %p161_p6 = scmp.lt.u32.totalorder %s157_s18, %s213_s2 }
 0x237   :  { %p163_p7 = pnand %p161_p6, %p158_p5 }
 0x239   :  { %166 = shalt.err (!%p163_p7)
}
 0x23a   :  { %116 = dma.vmem_to_hbm [thread:$0]  %s114_s13, 16, %s213_s2, [#allocation4]  }
 0x23b   :  { %167 = dma.done.wait [#allocation4], 16  }
 0x23c   :  { %168 = vsyncadd [#allocation4], 4294967280 }
 0x23d   :  { %120 = vsyncpa [#allocation4], 1 }

</bundles_post_ra>
